<compile_context>
chip_gen: v6e
topology: v6e:2x2x1
jax: 0.10.0
libtpu: 0.0.40
codegen_flags: <defaults>
</compile_context>

<pallas_src>
import jax
import jax.numpy as jnp
from jax import lax
from jax.experimental import pallas as pl
from jax.experimental.pallas import tpu as pltpu


def _round_up(n, m):
    return ((n + m - 1) // m) * m


def _vmem_limit_bytes():
    """Generation-aware scoped-VMEM limit: half of physical, capped at 64 MiB.

    -> 64 MiB on 128-MiB parts (v5e/v6e), 32 MiB on 64-MiB v7x.
    Falls back to a v7x-safe 32 MiB if the hardware query is unavailable.
    """
    cap = 64 * 1024 * 1024  # conservative fallback (v7x-sized)
    try:
        info = pltpu.get_tpu_info()
        cap_attr = getattr(info, "vmem_capacity_bytes", None)
        if cap_attr:
            cap = int(cap_attr)
    except Exception:
        pass
    return max(16 * 1024 * 1024, min(cap // 2, 64 * 1024 * 1024))


def _pick_batch_tile(b_rows, feat, vmem_limit):
    """Byte-budgeted batch tile: ~1-4 MiB per input buffer, >= 2 grid steps."""
    target = min(4 * 1024 * 1024, vmem_limit // 8)   # per-buffer budget
    lane_width = max(feat, 128)                      # VMEM lane padding if feat < 128
    tb = _round_up(max(1, target // (lane_width * 4)), 8)
    # Keep at least 2 tiles so v7x's two TensorCores both get work.
    tb = min(tb, _round_up(pl.cdiv(b_rows, 2), 8))
    return max(tb, 8)


def _linear_kernel(b_sref, x_ref, w_ref, o_ref):
    # b_sref: (1,)      scalar-prefetched bias in SMEM
    # x_ref : (tb, rd)  lane-dense (folded) batch tile in VMEM
    # w_ref : (rd, r)   block-diagonal folded weight (tiny, resident) in VMEM
    # o_ref : (tb, r)   output tile
    x = x_ref[...].astype(jnp.float32)
    w = w_ref[...].astype(jnp.float32)
    # One MXU pass does multiply + segmented reduce; MXU is otherwise idle and
    # the kernel is HBM-bound, so this is free.  HIGHEST keeps ~f32 accuracy.
    acc = jnp.dot(x, w,
                  precision=lax.Precision.HIGHEST,
                  preferred_element_type=jnp.float32)      # (tb, r)
    o_ref[...] = (acc + b_sref[0]).astype(o_ref.dtype)


def linear_forward(x, weight, bias):
    """x: (B, d), weight: (1, d), bias: (1,) -> (B, 1)"""
    B, d = x.shape
    assert weight.shape == (1, d)
    assert bias.shape == (1,)

    # ---- lane-dense fold for small d -------------------------------------
    if d < 128 and 128 % d == 0 and B % (128 // d) == 0:
        r = 128 // d
    else:
        r = 1
    rd = r * d
    bf = B // r
    xf = x.reshape(bf, rd)            # row-major contiguous -> free reshape

    # Block-diagonal folded weight: column g holds w in rows g*d:(g+1)*d.
    w_row = weight.reshape(d).astype(jnp.float32)
    w_fold = (jnp.eye(r, dtype=jnp.float32)[:, None, :]
              * w_row[None, :, None]).reshape(rd, r)

    # ---- tiling ----------------------------------------------------------
    vmem_limit = _vmem_limit_bytes()
    tb = _pick_batch_tile(bf, rd, vmem_limit)
    n_tiles = pl.cdiv(bf, tb)         # ragged tail handled by boundary blocks
    # NOTE: for extremely large d (where even an 8-row tile would not fit
    # double-buffered under the VMEM limit) a second "arbitrary" grid axis
    # over d with an f32 accumulator would be needed; not required here.

    out = pl.pallas_call(
        _linear_kernel,
        out_shape=jax.ShapeDtypeStruct((bf, r), x.dtype),
        grid_spec=pltpu.PrefetchScalarGridSpec(
            num_scalar_prefetch=1,                 # bias -> SMEM
            grid=(n_tiles,),
            in_specs=[
                pl.BlockSpec((tb, rd), lambda i, b: (i, 0)),   # x batch tile
                pl.BlockSpec((rd, r), lambda i, b: (0, 0)),    # folded weight
            ],
            out_specs=pl.BlockSpec((tb, r), lambda i, b: (i, 0)),
        ),
        compiler_params=pltpu.CompilerParams(
            dimension_semantics=("parallel",),     # batch tiles independent
            vmem_limit_bytes=vmem_limit,
        ),
    )(bias, xf, w_fold)

    return out.reshape(B, 1)


class Net:
    """JAX/Pallas mirror of the PyTorch Net(d) module (single Linear(d, 1))."""

    def __init__(self, d, key):
        kw, kb = jax.random.split(key)
        # Mimic nn.Linear's uniform(-1/sqrt(d), 1/sqrt(d)) init.
        bound = 1.0 / jnp.sqrt(jnp.float32(d))
        self.weight = jax.random.uniform(kw, (1, d), jnp.float32, -bound, bound)
        self.bias = jax.random.uniform(kb, (1,), jnp.float32, -bound, bound)

    def __call__(self, x):
        return linear_forward(x, self.weight, self.bias)


if __name__ == "__main__":
    key = jax.random.PRNGKey(0)
    k_params, k_x1, k_x2 = jax.random.split(key, 3)

    d = 32
    net = Net(d, k_params)

    def ref_fn(xx):
        # Pure elementwise-f32 reference (no matmul-precision ambiguity).
        return jnp.sum(xx * net.weight, axis=-1, keepdims=True) + net.bias

    # Small shape matching the module's toy usage (folded lane-dense path).
    batch = 8
    x = jax.random.normal(k_x1, (batch, d), jnp.float32)
    out = net(x)
    jax.block_until_ready(out)
    assert out.shape == (batch, 1)
    assert jnp.allclose(out, ref_fn(x), atol=1e-5, rtol=1e-5)

    # Larger batch, not divisible by the tile: multi-tile grid + masked
    # boundary block (no wrapper-side padding copy).
    batch2 = 300
    x2 = jax.random.normal(k_x2, (batch2, d), jnp.float32)
    out2 = net(x2)
    jax.block_until_ready(out2)
    assert out2.shape == (batch2, 1)
    assert jnp.allclose(out2, ref_fn(x2), atol=1e-5, rtol=1e-5)

    # Fallback (unfolded) path: B not divisible by the fold factor.
    batch3 = 10
    x3 = jax.random.normal(k_x1, (batch3, d), jnp.float32)
    out3 = net(x3)
    jax.block_until_ready(out3)
    assert out3.shape == (batch3, 1)
    assert jnp.allclose(out3, ref_fn(x3), atol=1e-5, rtol=1e-5)

    print("KERNEL_OK")
</pallas_src>

<mosaic_0001>
module attributes {stable_mosaic.version = 11 : i64} {
  func.func @_linear_kernel(%arg0: i32, %arg1: memref<1xf32, #tpu.memory_space<smem>>, %arg2: memref<8x128xf32, #tpu.memory_space<vmem>>, %arg3: memref<128x4xf32, #tpu.memory_space<vmem>>, %arg4: memref<8x4xf32, #tpu.memory_space<vmem>>) attributes {dimension_semantics = [#tpu.dimension_semantics<parallel>], iteration_bounds = array<i64: 1>, scalar_prefetch = 1 : i64, scratch_operands = 0 : i64, tpu.core_type = #tpu.core_type<tc>, window_params = [{transform_indices = @transform_0, window_bounds = array<i64: 8, 128>}, {pipeline_mode = #tpu.pipeline_mode<synchronous>, transform_indices = @transform_1, window_bounds = array<i64: 128, 4>}, {transform_indices = @transform_2, window_bounds = array<i64: 8, 4>}]} {
    %c0 = arith.constant 0 : index
    %c0_0 = arith.constant 0 : index
    %0 = vector.load %arg2[%c0, %c0_0] : memref<8x128xf32, #tpu.memory_space<vmem>>, vector<8x128xf32>
    %c0_1 = arith.constant 0 : index
    %c0_2 = arith.constant 0 : index
    %1 = vector.load %arg3[%c0_1, %c0_2] : memref<128x4xf32, #tpu.memory_space<vmem>>, vector<128x4xf32>
    %cst = arith.constant dense<0.000000e+00> : vector<8x4xf32>
    %2 = tpu.matmul %0, %1, %cst {dimension_numbers = #tpu.dot_dimension_numbers<[1], [0], [0], [1], [0, 0, 1, 1], [], []>, precision = #tpu.contract_precision<fp32>} : vector<8x128xf32>, vector<128x4xf32>, vector<8x4xf32> -> vector<8x4xf32>
    %c0_3 = arith.constant 0 : index
    %3 = memref.load %arg1[%c0_3] : memref<1xf32, #tpu.memory_space<smem>>
    %4 = vector.broadcast %3 : f32 to vector<8x4xf32>
    %5 = arith.addf %2, %4 : vector<8x4xf32>
    %c0_4 = arith.constant 0 : index
    %c0_5 = arith.constant 0 : index
    %6 = vector.load %arg4[%c0_4, %c0_5] : memref<8x4xf32, #tpu.memory_space<vmem>>, vector<8x4xf32>
    tpu.vector_store %arg4[%c0_4, %c0_5], %5 {strides = array<i32>} : memref<8x4xf32, #tpu.memory_space<vmem>>, vector<8x4xf32>,
    return
  }
  func.func @transform_0(%arg0: i32, %arg1: memref<1xf32, #tpu.memory_space<smem>>) -> (i32, i32) {
    %c0_i32 = arith.constant 0 : i32
    %c0_i32_0 = arith.constant 0 : i32
    return %arg0, %c0_i32 : i32, i32
  }
  func.func @transform_1(%arg0: i32, %arg1: memref<1xf32, #tpu.memory_space<smem>>) -> (i32, i32) {
    %c0_i32 = arith.constant 0 : i32
    %c0_i32_0 = arith.constant 0 : i32
    %c0_i32_1 = arith.constant 0 : i32
    return %c0_i32, %c0_i32_0 : i32, i32
  }
  func.func @transform_2(%arg0: i32, %arg1: memref<1xf32, #tpu.memory_space<smem>>) -> (i32, i32) {
    %c0_i32 = arith.constant 0 : i32
    %c0_i32_0 = arith.constant 0 : i32
    return %arg0, %c0_i32 : i32, i32
  }
}

</mosaic_0001>

<bundles_post_ra>
// kernel: tpu_custom_call.1
= control target key start
LH: loop header
LB: loop body
LE: loop exit
PB: predicated region body
PF: predicated region fallthrough
CT: control target
= control target key end

     0   :  { %9 = vsyncpa [#allocation5], 0  ;;  %v1031_v2 = vmov 0.0   ;;  %vm1032_vm0 = vmmov 0   ;;  %vm674_vm1 = vcmask 31744   ;;  %s1476_s0 = inlined_call_operand.<no memory space> [shape: f32[1], index: 0, kind: input, shape index: {}]   ;;  %s1477_s1 = inlined_call_operand.vmem [shape: f32[2,128], index: 1, kind: input, shape index: {}]   ;;  %s1478_s2 = inlined_call_operand.vmem [shape: f32[128,4], index: 2, kind: input, shape index: {}]   ;;  %s1479_s3 = inlined_call_operand.hbm [shape: f32[2,4], index: 3, kind: output, shape index: {}]  }
   0x1   :  { %v30_v0 = vld [vmem:[%s1478_s2 + $0x78] sm:$0xff]  ;;  %v29_v1 = vld [vmem:[%s1478_s2 + $0x70] sm:$0xff]  ;;  %794 = vmatprep.subr.mxu0 %v1031_v2  ;;  %v28_v5 = vld [vmem:[%s1478_s2 + $0x68] sm:$0xff]  ;;  %829 = vmatprep.subr.mxu1 %v1031_v2 }
   0x2   :  { %v1063_v3 = vand.u32 4294901760, %v30_v0  ;;  %v1065_v4 = vand.u32 4294901760, %v29_v1  ;;  %v27_v6 = vld [vmem:[%s1478_s2 + $0x60] sm:$0xff]  ;;  %v26_v7 = vld [vmem:[%s1478_s2 + $0x58] sm:$0xff]  ;;  %v1077_v8 = vand.u32 4294901760, %v28_v5  ;;  %v25_v11 = vld [vmem:[%s1478_s2 + $0x50] sm:$0xff]  ;;  %826 = vmatprep.mubr.msk.f32.mxu0 %vm1032_vm0, %v1031_v2  ;;  %861 = vmatprep.mubr.msk.f32.mxu1 %vm1032_vm0, %v1031_v2 }
   0x3   :  { %v1079_v9 = vand.u32 4294901760, %v27_v6  ;;  %v1081_v10 = vand.u32 4294901760, %v26_v7  ;;  %v24_v12 = vld [vmem:[%s1478_s2 + $0x48] sm:$0xff]  ;;  %v23_v13 = vld [vmem:[%s1478_s2 + $0x40] sm:$0xff]  ;;  %v1100_v15 = vand.u32 4294901760, %v25_v11  ;;  %v22_v18 = vld [vmem:[%s1478_s2 + $0x38] sm:$0xff] }
   0x4   :  { %795 = vmatpush3.msra.mxu0 %v1063_v3  ;;  %v1098_v14 = vsub.f32 %v30_v0, %v1063_v3  ;;  %v1103_v16 = vsub.f32 %v29_v1, %v1065_v4  ;;  %v1105_v17 = vand.u32 4294901760, %v24_v12  ;;  %v1112_v19 = vsub.f32 %v28_v5, %v1077_v8  ;;  %v21_v28 = vld [vmem:[%s1478_s2 + $0x30] sm:$0xff]  ;;  %v20_v36 = vld [vmem:[%s1478_s2 + $0x28] sm:$0xff]  ;;  %v19_v42 = vld [vmem:[%s1478_s2 + $0x20] sm:$0xff] }
   0x5   :  { %796 = vmatprep.subr.mxu0 %v1031_v2  ;;  %v1115_v20 = vsub.f32 %v27_v6, %v1079_v9  ;;  %v1120_v23 = vand.u32 4294901760, %v23_v13  ;;  %v1123_v24 = vsub.f32 %v26_v7, %v1081_v10  ;;  %v1128_v27 = vand.u32 4294901760, %v22_v18  ;;  %v18_v49 = vld [vmem:[%s1478_s2 + $0x18] sm:$0xff]  ;;  %v14_v50 = vld [vmem:[%s1477_s1] sm:$0xff]  ;;  %v17_v57 = vld [vmem:[%s1478_s2 + $0x10] sm:$0xff] }
   0x6   :  { %797 = vmatpush3.msra.mxu0 %v1065_v4  ;;  %v127_v21 = vand.u32 4294901760, %v1098_v14  ;;  %v134_v22 = vand.u32 4294901760, %v1103_v16  ;;  %v141_v25 = vand.u32 4294901760, %v1112_v19  ;;  %v1134_v29 = vsub.f32 %v25_v11, %v1100_v15  ;;  %v16_v63 = vld [vmem:[%s1478_s2 + $0x8] sm:$0xff]  ;;  %v15_v6 = vld [vmem:[%s1478_s2] sm:$0xff] }
   0x7   :  { %798 = vmatprep.subr.mxu0 %v1031_v2  ;;  %v148_v26 = vand.u32 4294901760, %v1115_v20  ;;  %v155_v32 = vand.u32 4294901760, %v1123_v24  ;;  %v1145_v33 = vsub.f32 %v24_v12, %v1105_v17  ;;  %v1159_v40 = vand.u32 4294901760, %v21_v28 }
   0x8   :  { %799 = vmatpush3.msra.mxu0 %v1077_v8  ;;  %v128_v30 = vsub.f32 %v1098_v14, %v127_v21  ;;  %v135_v31 = vsub.f32 %v1103_v16, %v134_v22  ;;  %v142_v34 = vsub.f32 %v1112_v19, %v141_v25  ;;  %v162_v35 = vand.u32 4294901760, %v1134_v29 }
   0x9   :  { %800 = vmatprep.subr.mxu0 %v1031_v2  ;;  %v149_v39 = vsub.f32 %v1115_v20, %v148_v26  ;;  %v169_v41 = vand.u32 4294901760, %v1145_v33  ;;  %v1167_v43 = vsub.f32 %v23_v13, %v1120_v23  ;;  %v156_v45 = vsub.f32 %v1123_v24, %v155_v32 }
   0xa   :  { %801 = vmatpush3.msra.mxu0 %v1079_v9  ;;  %v129_v37 = vand.u32 4294901760, %v128_v30  ;;  %v136_v38 = vand.u32 4294901760, %v135_v31  ;;  %v143_v44 = vand.u32 4294901760, %v142_v34  ;;  %v1173_v46 = vand.u32 4294901760, %v20_v36 }
   0xb   :  { %802 = vmatprep.subr.mxu0 %v1031_v2  ;;  %v1176_v47 = vsub.f32 %v22_v18, %v1128_v27  ;;  %v163_v48 = vsub.f32 %v1134_v29, %v162_v35  ;;  %v150_v51 = vand.u32 4294901760, %v149_v39  ;;  %v1190_v52 = vand.u32 4294901760, %v19_v42 }
   0xc   :  { %803 = vmatpush3.msra.mxu0 %v1081_v10  ;;  %830 = vmatpush3.msra.mxu1 %v129_v37  ;;  %v176_v53 = vand.u32 4294901760, %v1167_v43  ;;  %v1194_v54 = vsub.f32 %v21_v28, %v1159_v40  ;;  %v170_v55 = vsub.f32 %v1145_v33, %v169_v41  ;;  %v157_v58 = vand.u32 4294901760, %v156_v45 }
   0xd   :  { %804 = vmatprep.subr.mxu0 %v1031_v2  ;;  %831 = vmatprep.subr.mxu1 %v1031_v2  ;;  %v183_v56 = vand.u32 4294901760, %v1176_v47  ;;  %v1206_v59 = vand.u32 4294901760, %v18_v49  ;;  %v1209_v60 = vsub.f32 %v20_v36, %v1173_v46  ;;  %v1211_v61 = vand.u32 4294901760, %v14_v50 }
   0xe   :  { %805 = vmatpush3.msra.mxu0 %v1100_v15  ;;  %832 = vmatpush3.msra.mxu1 %v136_v38  ;;  %v164_v62 = vand.u32 4294901760, %v163_v48  ;;  %v177_v0 = vsub.f32 %v1167_v43, %v176_v53  ;;  %v1222_v1 = vand.u32 4294901760, %v17_v57  ;;  %v190_v5 = vand.u32 4294901760, %v1194_v54 }
   0xf   :  { %806 = vmatprep.subr.mxu0 %v1031_v2  ;;  %833 = vmatprep.subr.mxu1 %v1031_v2  ;;  %v1229_v7 = vsub.f32 %v19_v42, %v1190_v52  ;;  %v171_v11 = vand.u32 4294901760, %v170_v55  ;;  %v184_v12 = vsub.f32 %v1176_v47, %v183_v56  ;;  %v1237_v13 = vand.u32 4294901760, %v16_v63 }
  0x10   :  { %807 = vmatpush3.msra.mxu0 %v1105_v17  ;;  %834 = vmatpush3.msra.mxu1 %v143_v44  ;;  %v197_v18 = vand.u32 4294901760, %v1209_v60  ;;  %v1241_v28 = vsub.f32 %v14_v50, %v1211_v61  ;;  %v1244_v30 = vsub.f32 %v18_v49, %v1206_v59  ;;  %v1248_v31 = vand.u32 4294901760, %v15_v6 }
  0x11   :  { %808 = vmatprep.subr.mxu0 %v1031_v2  ;;  %835 = vmatprep.subr.mxu1 %v1031_v2  ;;  %v178_v34 = vand.u32 4294901760, %v177_v0  ;;  %v191_v36 = vsub.f32 %v1194_v54, %v190_v5  ;;  %v204_v37 = vand.u32 4294901760, %v1229_v7  ;;  %v1256_v38 = vsub.f32 %v17_v57, %v1222_v1 }
  0x12   :  { %809 = vmatpush3.msra.mxu0 %v1120_v23  ;;  %836 = vmatpush3.msra.mxu1 %v150_v51  ;;  %v185_v39 = vand.u32 4294901760, %v184_v12  ;;  %v198_v42 = vsub.f32 %v1209_v60, %v197_v18  ;;  %v116_v44 = vand.u32 4294901760, %v1241_v28  ;;  %v211_v45 = vand.u32 4294901760, %v1244_v30 }
  0x13   :  { %810 = vmatprep.subr.mxu0 %v1031_v2  ;;  %837 = vmatprep.subr.mxu1 %v1031_v2  ;;  %v1267_v48 = vsub.f32 %v16_v63, %v1237_v13  ;;  %v192_v49 = vand.u32 4294901760, %v191_v36  ;;  %v205_v50 = vsub.f32 %v1229_v7, %v204_v37  ;;  %v218_v51 = vand.u32 4294901760, %v1256_v38 }
  0x14   :  { %811 = vmatpush3.msra.mxu0 %v1128_v27  ;;  %838 = vmatpush3.msra.mxu1 %v157_v58  ;;  %v1277_v55 = vsub.f32 %v15_v6, %v1248_v31  ;;  %v199_v57 = vand.u32 4294901760, %v198_v42  ;;  %v117_v58 = vsub.f32 %v1241_v28, %v116_v44 }
  0x15   :  { %812 = vmatprep.subr.mxu0 %v1031_v2  ;;  %839 = vmatprep.subr.mxu1 %v1031_v2  ;;  %v225_v63 = vand.u32 4294901760, %v1267_v48  ;;  %v206_v0 = vand.u32 4294901760, %v205_v50  ;;  %v219_v6 = vsub.f32 %v1256_v38, %v218_v51 }
  0x16   :  { %813 = vmatpush3.msra.mxu0 %v1159_v40  ;;  %840 = vmatpush3.msra.mxu1 %v164_v62  ;;  %v212_v62 = vsub.f32 %v1244_v30, %v211_v45  ;;  %v118_v12 = vand.u32 4294901760, %v117_v58 }
  0x17   :  { %814 = vmatprep.subr.mxu0 %v1031_v2  ;;  %841 = vmatprep.subr.mxu1 %v1031_v2  ;;  %v226_v36 = vsub.f32 %v1267_v48, %v225_v63 }
  0x18   :  { %815 = vmatpush3.msra.mxu0 %v1173_v46  ;;  %842 = vmatpush3.msra.mxu1 %v171_v11  ;;  %v232_v11 = vand.u32 4294901760, %v1277_v55 }
  0x19   :  { %816 = vmatprep.subr.mxu0 %v1031_v2  ;;  %843 = vmatprep.subr.mxu1 %v1031_v2 }
  0x1a   :  { %817 = vmatpush3.msra.mxu0 %v1190_v52  ;;  %844 = vmatpush3.msra.mxu1 %v178_v34  ;;  %v213_v34 = vand.u32 4294901760, %v212_v62  ;;  %v233_v42 = vsub.f32 %v1277_v55, %v232_v11 }
  0x1b   :  { %818 = vmatprep.subr.mxu0 %v1031_v2  ;;  %845 = vmatprep.subr.mxu1 %v1031_v2 }
  0x1c   :  { %819 = vmatpush3.msra.mxu0 %v1206_v59  ;;  %846 = vmatpush3.msra.mxu1 %v185_v39  ;;  %v220_v39 = vand.u32 4294901760, %v219_v6  ;;  %v234_v50 = vand.u32 4294901760, %v233_v42 }
  0x1d   :  { %820 = vmatprep.subr.mxu0 %v1031_v2  ;;  %847 = vmatprep.subr.mxu1 %v1031_v2 }
  0x1e   :  { %821 = vmatpush3.msra.mxu0 %v1222_v1  ;;  %848 = vmatpush3.msra.mxu1 %v192_v49  ;;  %v227_v49 = vand.u32 4294901760, %v226_v36 }
  0x1f   :  { %822 = vmatprep.subr.mxu0 %v1031_v2  ;;  %849 = vmatprep.subr.mxu1 %v1031_v2 }
  0x20   :  { %823 = vmatpush3.msra.mxu0 %v1237_v13  ;;  %850 = vmatpush3.msra.mxu1 %v199_v57 }
  0x21   :  { %824 = vmatprep.subr.mxu0 %v1031_v2  ;;  %851 = vmatprep.subr.mxu1 %v1031_v2 }
  0x22   :  { %825 = vmatpush3.msra.mxu0 %v1248_v31  ;;  %852 = vmatpush3.msra.mxu1 %v206_v0 }
  0x23   :  { %853 = vmatprep.subr.mxu1 %v1031_v2  ;;  %864 = vmatprep.subr.mxu0 %v1031_v2 }
  0x24   :  { %827 = vmatmul.mubr.f32.vlgmr.msra.gmra.mxu0 %v118_v12  ;;  %854 = vmatpush3.msra.mxu1 %v213_v34 }
  0x25   :  { %865 = vmatpush3.msra.mxu0 %v1098_v14  ;;  %855 = vmatprep.subr.mxu1 %v1031_v2 }
  0x26   :  { %866 = vmatprep.subr.mxu0 %v1031_v2  ;;  %856 = vmatpush3.msra.mxu1 %v220_v39 }
  0x27   :  { %867 = vmatpush3.msra.mxu0 %v1103_v16  ;;  %857 = vmatprep.subr.mxu1 %v1031_v2 }
  0x28   :  { %868 = vmatprep.subr.mxu0 %v1031_v2  ;;  %858 = vmatpush3.msra.mxu1 %v227_v49 }
  0x29   :  { %869 = vmatpush3.msra.mxu0 %v1112_v19  ;;  %859 = vmatprep.subr.mxu1 %v1031_v2 }
  0x2a   :  { %870 = vmatprep.subr.mxu0 %v1031_v2  ;;  %860 = vmatpush3.msra.mxu1 %v234_v50 }
  0x2b   :  { %871 = vmatpush3.msra.mxu0 %v1115_v20  ;;  %862 = vmatmul.mubr.f32.vlgmr.msra.gmra.mxu1 %v1211_v61 }
  0x2c   :  { %872 = vmatprep.subr.mxu0 %v1031_v2  ;;  %899 = vmatprep.subr.mxu1 %v1031_v2 }
  0x2d   :  { %873 = vmatpush3.msra.mxu0 %v1123_v24  ;;  %900 = vmatpush3.msra.mxu1 %v1063_v3 }
  0x2e   :  { %874 = vmatprep.subr.mxu0 %v1031_v2  ;;  %901 = vmatprep.subr.mxu1 %v1031_v2 }
  0x2f   :  { %875 = vmatpush3.msra.mxu0 %v1134_v29  ;;  %902 = vmatpush3.msra.mxu1 %v1065_v4 }
  0x30   :  { %876 = vmatprep.subr.mxu0 %v1031_v2  ;;  %903 = vmatprep.subr.mxu1 %v1031_v2 }
  0x31   :  { %877 = vmatpush3.msra.mxu0 %v1145_v33  ;;  %904 = vmatpush3.msra.mxu1 %v1077_v8 }
  0x32   :  { %878 = vmatprep.subr.mxu0 %v1031_v2  ;;  %905 = vmatprep.subr.mxu1 %v1031_v2 }
  0x33   :  { %879 = vmatpush3.msra.mxu0 %v1167_v43  ;;  %906 = vmatpush3.msra.mxu1 %v1079_v9 }
  0x34   :  { %880 = vmatprep.subr.mxu0 %v1031_v2  ;;  %907 = vmatprep.subr.mxu1 %v1031_v2 }
  0x35   :  { %881 = vmatpush3.msra.mxu0 %v1176_v47  ;;  %908 = vmatpush3.msra.mxu1 %v1081_v10 }
  0x36   :  { %882 = vmatprep.subr.mxu0 %v1031_v2  ;;  %909 = vmatprep.subr.mxu1 %v1031_v2 }
  0x37   :  { %883 = vmatpush3.msra.mxu0 %v1194_v54  ;;  %910 = vmatpush3.msra.mxu1 %v1100_v15 }
  0x38   :  { %884 = vmatprep.subr.mxu0 %v1031_v2  ;;  %911 = vmatprep.subr.mxu1 %v1031_v2 }
  0x39   :  { %885 = vmatpush3.msra.mxu0 %v1209_v60  ;;  %912 = vmatpush3.msra.mxu1 %v1105_v17 }
  0x3a   :  { %886 = vmatprep.subr.mxu0 %v1031_v2  ;;  %913 = vmatprep.subr.mxu1 %v1031_v2 }
  0x3b   :  { %887 = vmatpush3.msra.mxu0 %v1229_v7  ;;  %914 = vmatpush3.msra.mxu1 %v1120_v23 }
  0x3c   :  { %888 = vmatprep.subr.mxu0 %v1031_v2  ;;  %915 = vmatprep.subr.mxu1 %v1031_v2 }
  0x3d   :  { %889 = vmatpush3.msra.mxu0 %v1244_v30  ;;  %916 = vmatpush3.msra.mxu1 %v1128_v27 }
  0x3e   :  { %890 = vmatprep.subr.mxu0 %v1031_v2  ;;  %917 = vmatprep.subr.mxu1 %v1031_v2 }
  0x3f   :  { %891 = vmatpush3.msra.mxu0 %v1256_v38  ;;  %918 = vmatpush3.msra.mxu1 %v1159_v40 }
  0x40   :  { %892 = vmatprep.subr.mxu0 %v1031_v2  ;;  %919 = vmatprep.subr.mxu1 %v1031_v2 }
  0x41   :  { %893 = vmatpush3.msra.mxu0 %v1267_v48  ;;  %920 = vmatpush3.msra.mxu1 %v1173_v46 }
  0x42   :  { %894 = vmatprep.subr.mxu0 %v1031_v2  ;;  %921 = vmatprep.subr.mxu1 %v1031_v2 }
  0x43   :  { %895 = vmatpush3.msra.mxu0 %v1277_v55  ;;  %896 = vmatprep.mubr.msk.f32.mxu0 %vm1032_vm0, %v1031_v2 }
  0x44   :  { %922 = vmatpush3.msra.mxu1 %v1190_v52  ;;  %897 = vmatmul.mubr.f32.vlgmr.msra.gmra.mxu0 %v1241_v28 }
  0x45   :  { %923 = vmatprep.subr.mxu1 %v1031_v2  ;;  %934 = vmatprep.subr.mxu0 %v1031_v2 }
  0x46   :  { %924 = vmatpush3.msra.mxu1 %v1206_v59  ;;  %935 = vmatpush3.msra.mxu0 %v127_v21 }
  0x47   :  { %925 = vmatprep.subr.mxu1 %v1031_v2  ;;  %936 = vmatprep.subr.mxu0 %v1031_v2 }
  0x48   :  { %926 = vmatpush3.msra.mxu1 %v1222_v1  ;;  %937 = vmatpush3.msra.mxu0 %v134_v22 }
  0x49   :  { %927 = vmatprep.subr.mxu1 %v1031_v2  ;;  %938 = vmatprep.subr.mxu0 %v1031_v2 }
  0x4a   :  { %928 = vmatpush3.msra.mxu1 %v1237_v13  ;;  %939 = vmatpush3.msra.mxu0 %v141_v25 }
  0x4b   :  { %929 = vmatprep.subr.mxu1 %v1031_v2  ;;  %940 = vmatprep.subr.mxu0 %v1031_v2 }
  0x4c   :  { %930 = vmatpush3.msra.mxu1 %v1248_v31  ;;  %931 = vmatprep.mubr.msk.f32.mxu1 %vm1032_vm0, %v1031_v2 }
  0x4d   :  { %941 = vmatpush3.msra.mxu0 %v148_v26  ;;  %932 = vmatmul.mubr.f32.vlgmr.msra.gmra.mxu1 %v116_v44 }
  0x4e   :  { %942 = vmatprep.subr.mxu0 %v1031_v2  ;;  %969 = vmatprep.subr.mxu1 %v1031_v2 }
  0x4f   :  { %943 = vmatpush3.msra.mxu0 %v155_v32  ;;  %970 = vmatpush3.msra.mxu1 %v1063_v3 }
  0x50   :  { %944 = vmatprep.subr.mxu0 %v1031_v2  ;;  %971 = vmatprep.subr.mxu1 %v1031_v2 }
  0x51   :  { %945 = vmatpush3.msra.mxu0 %v162_v35  ;;  %972 = vmatpush3.msra.mxu1 %v1065_v4 }
  0x52   :  { %946 = vmatprep.subr.mxu0 %v1031_v2  ;;  %973 = vmatprep.subr.mxu1 %v1031_v2 }
  0x53   :  { %947 = vmatpush3.msra.mxu0 %v169_v41  ;;  %974 = vmatpush3.msra.mxu1 %v1077_v8 }
  0x54   :  { %948 = vmatprep.subr.mxu0 %v1031_v2  ;;  %975 = vmatprep.subr.mxu1 %v1031_v2 }
  0x55   :  { %949 = vmatpush3.msra.mxu0 %v176_v53  ;;  %976 = vmatpush3.msra.mxu1 %v1079_v9 }
  0x56   :  { %950 = vmatprep.subr.mxu0 %v1031_v2  ;;  %977 = vmatprep.subr.mxu1 %v1031_v2 }
  0x57   :  { %951 = vmatpush3.msra.mxu0 %v183_v56  ;;  %978 = vmatpush3.msra.mxu1 %v1081_v10 }
  0x58   :  { %952 = vmatprep.subr.mxu0 %v1031_v2  ;;  %979 = vmatprep.subr.mxu1 %v1031_v2 }
  0x59   :  { %953 = vmatpush3.msra.mxu0 %v190_v5  ;;  %980 = vmatpush3.msra.mxu1 %v1100_v15 }
  0x5a   :  { %954 = vmatprep.subr.mxu0 %v1031_v2  ;;  %981 = vmatprep.subr.mxu1 %v1031_v2 }
  0x5b   :  { %955 = vmatpush3.msra.mxu0 %v197_v18  ;;  %982 = vmatpush3.msra.mxu1 %v1105_v17  ;;  %v32_v17 = vstv %s1476_s0 }
  0x5c   :  { %956 = vmatprep.subr.mxu0 %v1031_v2  ;;  %983 = vmatprep.subr.mxu1 %v1031_v2 }
  0x5d   :  { %957 = vmatpush3.msra.mxu0 %v204_v37  ;;  %984 = vmatpush3.msra.mxu1 %v1120_v23 }
  0x5e   :  { %958 = vmatprep.subr.mxu0 %v1031_v2  ;;  %985 = vmatprep.subr.mxu1 %v1031_v2 }
  0x5f   :  { %959 = vmatpush3.msra.mxu0 %v211_v45  ;;  %986 = vmatpush3.msra.mxu1 %v1128_v27 }
  0x60   :  { %960 = vmatprep.subr.mxu0 %v1031_v2  ;;  %987 = vmatprep.subr.mxu1 %v1031_v2 }
  0x61   :  { %961 = vmatpush3.msra.mxu0 %v218_v51  ;;  %988 = vmatpush3.msra.mxu1 %v1159_v40 }
  0x62   :  { %962 = vmatprep.subr.mxu0 %v1031_v2  ;;  %989 = vmatprep.subr.mxu1 %v1031_v2 }
  0x63   :  { %963 = vmatpush3.msra.mxu0 %v225_v63  ;;  %990 = vmatpush3.msra.mxu1 %v1173_v46 }
  0x64   :  { %964 = vmatprep.subr.mxu0 %v1031_v2  ;;  %991 = vmatprep.subr.mxu1 %v1031_v2 }
  0x65   :  { %965 = vmatpush3.msra.mxu0 %v232_v11  ;;  %966 = vmatprep.mubr.msk.f32.mxu0 %vm1032_vm0, %v1031_v2 }
  0x66   :  { %992 = vmatpush3.msra.mxu1 %v1190_v52  ;;  %967 = vmatmul.mubr.f32.vlgmr.msra.gmra.mxu0 %v1211_v61 }
  0x67   :  { %993 = vmatprep.subr.mxu1 %v1031_v2  ;;  %1001 = vmatprep.mubr.msk.f32.mxu1 %vm1032_vm0, %v1031_v2 }
  0x68   :  { %994 = vmatpush3.msra.mxu1 %v1206_v59 }
  0x69   :  { %995 = vmatprep.subr.mxu1 %v1031_v2 }
  0x6a   :  { %996 = vmatpush3.msra.mxu1 %v1222_v1 }
  0x6b   :  { %997 = vmatprep.subr.mxu1 %v1031_v2 }
  0x6c   :  { %998 = vmatpush3.msra.mxu1 %v1237_v13 }
  0x6d   :  { %999 = vmatprep.subr.mxu1 %v1031_v2 }
  0x6e   :  { %1000 = vmatpush3.msra.mxu1 %v1248_v31 }
  0x6f   :  { %1002 = vmatmul.mubr.f32.vlgmr.msra.gmra.mxu1 %v1211_v61 }
  0xe4   :  { %v120_v3 = vpop.f32.mrf.mxu0 }
  0xe5   :  { %v121_v19 = vadd.f32 %v120_v3, %v32_v17 }
  0xe6   :  { %v828_v4 = vpop.f32.mrf.mxu0 }
  0xeb   :  { %v271_v8 = vpop.f32.mrf.mxu1 }
  0xec   :  { %v272_v21 = vadd.f32 %v271_v8, %v121_v19 }
  0xed   :  { %v863_v9 = vpop.f32.mrf.mxu1 }
 0x104   :  { %v375_v10 = vpop.f32.mrf.mxu0 }
 0x105   :  { %v376_v22 = vadd.f32 %v375_v10, %v272_v21 }
 0x106   :  { %v898_v14 = vpop.f32.mrf.mxu0 }
 0x10d   :  { %v464_v15 = vpop.f32.mrf.mxu1 }
 0x10e   :  { %v465_v23 = vadd.f32 %v464_v15, %v376_v22 }
 0x10f   :  { %v933_v16 = vpop.f32.mrf.mxu1 }
 0x126   :  { %v583_v20 = vpop.f32.mrf.mxu0 }
 0x127   :  { %v584_v24 = vadd.f32 %v583_v20, %v465_v23 }
 0x128   :  { %v968_v2 = vpop.f32.mrf.mxu0 }
 0x12f   :  { %v670_v25 = vpop.f32.mrf.mxu1 }
 0x130   :  { %v671_v26 = vadd.f32 %v670_v25, %v584_v24 }
 0x131   :  { %v1003_v27 = vpop.f32.mrf.mxu1 }
 0x132   :  { %675 = vst.msk [vmem:[#allocation4] sm:$0xff] %vm674_vm1, %v671_v26 }
 0x133   :  { %680 = vsyncadd [#allocation5], 96  ;;  %s1033_s19 = smov [#allocation4]  }
 0x134   :  { %s681_s20 = sshll.u32 %s1033_s19, 4  ;;  %s682_s20 = int_to_ptr.vmem [resolvable:$true] %s681_s20 }
 0x135   :  { %s1009_s21 = scalar_lea.vmem %s682_s20, 32  ;;  %s1013_s22 = scalar_lea.vmem %s682_s20, 128 }
 0x136   :  { %p1010_p0 = scmp.ne.s32.totalorder %s682_s20, %s1009_s21  ;;  %p1014_p1 = scmp.lt.s32.totalorder %s682_s20, %s682_s20 }
 0x137   :  { %p1015_p2 = scmp.lt.s32.totalorder %s1013_s22, %s1009_s21 }
 0x139   :  { %p1016_p3 = por %p1015_p2, %p1014_p1 }
 0x13b   :  { %p1017_p4 = pnand %p1016_p3, %p1010_p0 }
 0x13d   :  { %1020 = shalt.err (!%p1017_p4)
}
 0x13e   :  { %s1034_s0 = smov 32   ;;  %s1035_s23 = smov 2  }
 0x13f   :  { %687 = dma.vmem_to_hbm [thread:$0]  %s682_s20, 32, %s1479_s3, [#allocation5], %s1034_s0, %s1034_s0, %s1035_s23  }
 0x140   :  { %1029 = dma.done.wait [#allocation5], 128  }
 0x141   :  { %1030 = vsyncadd [#allocation5], 4294967168 }
 0x142   :  { %691 = vsyncpa [#allocation5], 1 }

</bundles_post_ra>
